<compile_context>
chip_gen: v7x
topology: tpu7x:2x2x1
jax: 0.10.0
libtpu: 0.0.40
codegen_flags: <defaults>
</compile_context>

<pallas_src>
import jax
import jax.numpy as jnp
from jax.experimental import pallas as pl
from jax.experimental.pallas import tpu as pltpu

_LANE = 128


def _round_up(x, m):
    return ((x + m - 1) // m) * m


def _linear_kernel(x_ref, w_ref, b_ref, o_ref, acc_ref):
    # x_ref: (TM, TK)  w_ref: (TN, TK)  b_ref: (1, TN)  o_ref: (TM, TN)
    k = pl.program_id(2)

    @pl.when(k == 0)
    def _init():
        acc_ref[...] = jnp.zeros_like(acc_ref)

    # Contract on K directly from the torch (N, K) weight layout; the MXU
    # consumes the transposed-RHS form natively (no per-step XLU transpose,
    # no wrapper-side weight.T HBM pass).
    acc_ref[...] += jax.lax.dot_general(
        x_ref[...], w_ref[...],
        dimension_numbers=(((1,), (1,)), ((), ())),
        preferred_element_type=jnp.float32,
    )

    @pl.when(k == pl.num_programs(2) - 1)
    def _finalize():
        o_ref[...] = (acc_ref[...] + b_ref[...]).astype(o_ref.dtype)


def _vmem_numbers():
    """Generation-aware (VMEM budget, scoped vmem_limit_bytes)."""
    try:
        cap = pltpu.get_tpu_info().vmem_capacity_bytes
    except Exception:  # conservative fallback that is legal everywhere
        cap = 64 * 1024 * 1024
    if cap >= 100 * 1024 * 1024:                      # v5e / v6e: 128 MiB VMEM
        return 90 * 1024 * 1024, 110 * 1024 * 1024
    return 40 * 1024 * 1024, 52 * 1024 * 1024         # v7x: 64 MiB per TC


def linear_forward(x, weight, bias):
    """y = x @ weight.T + bias (torch.nn.Linear semantics).

    x: (M, K) ; weight: (N, K) ; bias: (N,)
    """
    M, K = x.shape
    N, K2 = weight.shape
    assert K == K2, "input feature dim mismatch"

    itemsize = jnp.dtype(x.dtype).itemsize
    sublane = {4: 8, 2: 16, 1: 32}.get(itemsize, 8)   # dtype-aware sublane pack
    budget, vmem_limit = _vmem_numbers()

    # ---- N / K tiling decisions ---------------------------------------------
    # Resident path: whole (N, K) weight + bias stay in VMEM (single-buffered),
    # only M is tiled. Otherwise stream the weight in N (and, if needed, K)
    # tiles through an accumulator.
    resident = N * K * itemsize <= budget // 2

    if resident:
        # Lane-dense output only matters when N < 128 (sub-128-lane writes are
        # the expensive masked vst case); a larger ragged N keeps a full-dim
        # block and avoids an extra HBM pass to slice padding off the output.
        Np = _LANE if N < _LANE else N
        Kp = K
        tile_n, tile_k = Np, Kp
    else:
        Np = _round_up(N, _LANE)
        tile_n = 256 if Np % 256 == 0 else _LANE
        if tile_n * K * itemsize <= budget // 4:
            Kp, tile_k = K, K             # full-K strips: no pad pass over x
        else:
            Kp = _round_up(K, _LANE)
            tile_k = next(t for t in (512, 256, _LANE) if Kp % t == 0)

    # ---- pad operands only where required -----------------------------------
    x_p = x if Kp == K else jnp.pad(x, ((0, 0), (0, Kp - K)))
    w_p = weight if (Np, Kp) == (N, K) else jnp.pad(
        weight, ((0, Np - N), (0, Kp - K)))
    b_p = (bias if Np == N else jnp.pad(bias, (0, Np - N))).reshape(1, Np)

    # ---- tile_m: aim for >= 8 grid blocks (>= 4 per TC on v7x) ---------------
    tile_m = max(256, min(512, _round_up(pl.cdiv(M, 8), sublane)))
    if tile_m >= M:
        tile_m = M                         # full-dim block (always legal)

    w_bufs = 1 if resident else 2
    b_bufs = 1 if resident else 2

    def _vmem_bytes(tm):
        return (2 * tm * tile_k * itemsize          # x   (double buffered)
                + 2 * tm * tile_n * itemsize        # out (double buffered)
                + w_bufs * tile_n * tile_k * itemsize
                + b_bufs * tile_n * itemsize
                + tm * tile_n * 4)                  # f32 accumulator scratch

    while tile_m > sublane and _vmem_bytes(tile_m) > budget:
        tile_m = max(sublane, _round_up(tile_m // 2, sublane))

    grid = (pl.cdiv(M, tile_m), Np // tile_n, Kp // tile_k)

    # Resident weight/bias have constant index maps -> fetched once; keep a
    # single VMEM buffer instead of the default two.
    def _const_spec(shape, index_map, single_buffer):
        if single_buffer:
            try:
                return pl.BlockSpec(shape, index_map,
                                    pipeline_mode=pl.Buffered(1))
            except (TypeError, AttributeError):
                pass
        return pl.BlockSpec(shape, index_map)

    def _build(single_buffer_resident):
        return pl.pallas_call(
            _linear_kernel,
            out_shape=jax.ShapeDtypeStruct((M, Np), x.dtype),
            grid_spec=pltpu.PrefetchScalarGridSpec(
                num_scalar_prefetch=0,
                grid=grid,
                in_specs=[
                    pl.BlockSpec((tile_m, tile_k), lambda i, j, k: (i, k)),
                    _const_spec((tile_n, tile_k), lambda i, j, k: (j, k),
                                single_buffer_resident),
                    _const_spec((1, tile_n), lambda i, j, k: (0, j),
                                single_buffer_resident),
                ],
                out_specs=pl.BlockSpec((tile_m, tile_n),
                                       lambda i, j, k: (i, j)),
                scratch_shapes=[pltpu.VMEM((tile_m, tile_n), jnp.float32)],
            ),
            compiler_params=pltpu.CompilerParams(
                dimension_semantics=("parallel", "parallel", "arbitrary"),
                vmem_limit_bytes=vmem_limit,
            ),
        )

    if resident:
        try:
            out = jax.block_until_ready(_build(True)(x_p, w_p, b_p))
        except Exception:
            # Fallback if single-buffered (Buffered(1)) resident specs are
            # rejected by this jax/Mosaic version.
            out = _build(False)(x_p, w_p, b_p)
    else:
        out = _build(False)(x_p, w_p, b_p)

    return out[:, :N] if Np != N else out


if __name__ == "__main__":
    # Module config: linearRegression(inputSize=32, outputSize=16)
    input_size, output_size = 32, 16
    batch = 8

    key = jax.random.PRNGKey(0)
    kx, kw, kb = jax.random.split(key, 3)

    # torch.nn.Linear parameter shapes: W (out, in), b (out,)
    x = jax.random.normal(kx, (batch, input_size), dtype=jnp.float32)
    bound = float(1.0 / (input_size ** 0.5))
    weight = jax.random.uniform(kw, (output_size, input_size),
                                minval=-bound, maxval=bound, dtype=jnp.float32)
    bias = jax.random.uniform(kb, (output_size,),
                              minval=-bound, maxval=bound, dtype=jnp.float32)

    out = linear_forward(x, weight, bias)
    out = jax.block_until_ready(out)

    # Correctness check against plain-JAX reference (same math as torch Linear).
    ref = x @ weight.T + bias
    assert out.shape == (batch, output_size)
    assert jnp.allclose(out, ref, atol=1e-5, rtol=1e-5)

    print("KERNEL_OK")
</pallas_src>

<mosaic_0001>
module attributes {stable_mosaic.version = 11 : i64} {
  func.func @_linear_kernel(%arg0: i32, %arg1: i32, %arg2: i32, %arg3: memref<8x32xf32, #tpu.memory_space<vmem>>, %arg4: memref<128x32xf32, #tpu.memory_space<vmem>>, %arg5: memref<1x128xf32, #tpu.memory_space<vmem>>, %arg6: memref<8x128xf32, #tpu.memory_space<vmem>>, %arg7: memref<8x128xf32, #tpu.memory_space<vmem>>) attributes {dimension_semantics = [#tpu.dimension_semantics<parallel>, #tpu.dimension_semantics<parallel>, #tpu.dimension_semantics<arbitrary>], iteration_bounds = array<i64: 1, 1, 1>, scalar_prefetch = 0 : i64, scratch_operands = 1 : i64, tpu.core_type = #tpu.core_type<tc>, window_params = [{transform_indices = @transform_0, window_bounds = array<i64: 8, 32>}, {pipeline_mode = #tpu.pipeline_mode<synchronous>, transform_indices = @transform_1, window_bounds = array<i64: 128, 32>}, {pipeline_mode = #tpu.pipeline_mode<synchronous>, transform_indices = @transform_2, window_bounds = array<i64: 1, 128>}, {transform_indices = @transform_3, window_bounds = array<i64: 8, 128>}]} {
    %c0_i32 = arith.constant 0 : i32
    %0 = arith.cmpi eq, %arg2, %c0_i32 : i32
    %1 = arith.extui %0 : i1 to i32
    %c0_i32_0 = arith.constant 0 : i32
    %2 = arith.cmpi ne, %1, %c0_i32_0 : i32
    scf.if %2 {
      %cst_10 = arith.constant 0.000000e+00 : f32
      %12 = vector.broadcast %cst_10 : f32 to vector<8x128xf32>
      %c0_11 = arith.constant 0 : index
      %c0_12 = arith.constant 0 : index
      %13 = vector.load %arg7[%c0_11, %c0_12] : memref<8x128xf32, #tpu.memory_space<vmem>>, vector<8x128xf32>
      tpu.vector_store %arg7[%c0_11, %c0_12], %12 {strides = array<i32>} : memref<8x128xf32, #tpu.memory_space<vmem>>, vector<8x128xf32>,
    } else {
    }
    %c0 = arith.constant 0 : index
    %c0_1 = arith.constant 0 : index
    %3 = vector.load %arg7[%c0, %c0_1] : memref<8x128xf32, #tpu.memory_space<vmem>>, vector<8x128xf32>
    %c0_2 = arith.constant 0 : index
    %c0_3 = arith.constant 0 : index
    %4 = vector.load %arg3[%c0_2, %c0_3] : memref<8x32xf32, #tpu.memory_space<vmem>>, vector<8x32xf32>
    %c0_4 = arith.constant 0 : index
    %c0_5 = arith.constant 0 : index
    %5 = vector.load %arg4[%c0_4, %c0_5] : memref<128x32xf32, #tpu.memory_space<vmem>>, vector<128x32xf32>
    %cst = arith.constant dense<0.000000e+00> : vector<8x128xf32>
    %6 = tpu.matmul %4, %5, %cst {dimension_numbers = #tpu.dot_dimension_numbers<[1], [1], [0], [0], [0, 0, 1, 0], [], []>} : vector<8x32xf32>, vector<128x32xf32>, vector<8x128xf32> -> vector<8x128xf32>
    %7 = arith.addf %3, %6 : vector<8x128xf32>
    %c0_6 = arith.constant 0 : index
    %c0_7 = arith.constant 0 : index
    %8 = vector.load %arg7[%c0_6, %c0_7] : memref<8x128xf32, #tpu.memory_space<vmem>>, vector<8x128xf32>
    tpu.vector_store %arg7[%c0_6, %c0_7], %7 {strides = array<i32>} : memref<8x128xf32, #tpu.memory_space<vmem>>, vector<8x128xf32>,
    %c0_i32_8 = arith.constant 0 : i32
    %9 = arith.cmpi eq, %arg2, %c0_i32_8 : i32
    %10 = arith.extui %9 : i1 to i32
    %c0_i32_9 = arith.constant 0 : i32
    %11 = arith.cmpi ne, %10, %c0_i32_9 : i32
    scf.if %11 {
      %c0_10 = arith.constant 0 : index
      %c0_11 = arith.constant 0 : index
      %12 = vector.load %arg7[%c0_10, %c0_11] : memref<8x128xf32, #tpu.memory_space<vmem>>, vector<8x128xf32>
      %c0_12 = arith.constant 0 : index
      %c0_13 = arith.constant 0 : index
      %13 = vector.load %arg5[%c0_12, %c0_13] : memref<1x128xf32, #tpu.memory_space<vmem>>, vector<1x128xf32>
      %14 = vector.broadcast %13 : vector<1x128xf32> to vector<8x128xf32>
      %15 = arith.addf %12, %14 : vector<8x128xf32>
      %c0_14 = arith.constant 0 : index
      %c0_15 = arith.constant 0 : index
      %16 = vector.load %arg6[%c0_14, %c0_15] : memref<8x128xf32, #tpu.memory_space<vmem>>, vector<8x128xf32>
      tpu.vector_store %arg6[%c0_14, %c0_15], %15 {strides = array<i32>} : memref<8x128xf32, #tpu.memory_space<vmem>>, vector<8x128xf32>,
    } else {
    }
    return
  }
  func.func @transform_0(%arg0: i32, %arg1: i32, %arg2: i32) -> (i32, i32) {
    %c0_i32 = arith.constant 0 : i32
    return %arg0, %arg2 : i32, i32
  }
  func.func @transform_1(%arg0: i32, %arg1: i32, %arg2: i32) -> (i32, i32) {
    %c0_i32 = arith.constant 0 : i32
    return %arg1, %arg2 : i32, i32
  }
  func.func @transform_2(%arg0: i32, %arg1: i32, %arg2: i32) -> (i32, i32) {
    %c0_i32 = arith.constant 0 : i32
    %c0_i32_0 = arith.constant 0 : i32
    return %c0_i32, %arg1 : i32, i32
  }
  func.func @transform_3(%arg0: i32, %arg1: i32, %arg2: i32) -> (i32, i32) {
    %c0_i32 = arith.constant 0 : i32
    return %arg0, %arg1 : i32, i32
  }
}

module attributes {stable_mosaic.version = 11 : i64} {
  func.func @_linear_kernel(%arg0: i32, %arg1: i32, %arg2: i32, %arg3: memref<8x32xf32, #tpu.memory_space<vmem>>, %arg4: memref<128x32xf32, #tpu.memory_space<vmem>>, %arg5: memref<1x128xf32, #tpu.memory_space<vmem>>, %arg6: memref<8x128xf32, #tpu.memory_space<vmem>>, %arg7: memref<8x128xf32, #tpu.memory_space<vmem>>) attributes {dimension_semantics = [#tpu.dimension_semantics<parallel>, #tpu.dimension_semantics<parallel>, #tpu.dimension_semantics<arbitrary>], iteration_bounds = array<i64: 1, 1, 1>, scalar_prefetch = 0 : i64, scratch_operands = 1 : i64, tpu.core_type = #tpu.core_type<tc>, window_params = [{transform_indices = @transform_0, window_bounds = array<i64: 8, 32>}, {transform_indices = @transform_1, window_bounds = array<i64: 128, 32>}, {transform_indices = @transform_2, window_bounds = array<i64: 1, 128>}, {transform_indices = @transform_3, window_bounds = array<i64: 8, 128>}]} {
    %c0_i32 = arith.constant 0 : i32
    %0 = arith.cmpi eq, %arg2, %c0_i32 : i32
    %1 = arith.extui %0 : i1 to i32
    %c0_i32_0 = arith.constant 0 : i32
    %2 = arith.cmpi ne, %1, %c0_i32_0 : i32
    scf.if %2 {
      %cst_10 = arith.constant 0.000000e+00 : f32
      %12 = vector.broadcast %cst_10 : f32 to vector<8x128xf32>
      %c0_11 = arith.constant 0 : index
      %c0_12 = arith.constant 0 : index
      %13 = vector.load %arg7[%c0_11, %c0_12] : memref<8x128xf32, #tpu.memory_space<vmem>>, vector<8x128xf32>
      tpu.vector_store %arg7[%c0_11, %c0_12], %12 {strides = array<i32>} : memref<8x128xf32, #tpu.memory_space<vmem>>, vector<8x128xf32>,
    } else {
    }
    %c0 = arith.constant 0 : index
    %c0_1 = arith.constant 0 : index
    %3 = vector.load %arg7[%c0, %c0_1] : memref<8x128xf32, #tpu.memory_space<vmem>>, vector<8x128xf32>
    %c0_2 = arith.constant 0 : index
    %c0_3 = arith.constant 0 : index
    %4 = vector.load %arg3[%c0_2, %c0_3] : memref<8x32xf32, #tpu.memory_space<vmem>>, vector<8x32xf32>
    %c0_4 = arith.constant 0 : index
    %c0_5 = arith.constant 0 : index
    %5 = vector.load %arg4[%c0_4, %c0_5] : memref<128x32xf32, #tpu.memory_space<vmem>>, vector<128x32xf32>
    %cst = arith.constant dense<0.000000e+00> : vector<8x128xf32>
    %6 = tpu.matmul %4, %5, %cst {dimension_numbers = #tpu.dot_dimension_numbers<[1], [1], [0], [0], [0, 0, 1, 0], [], []>} : vector<8x32xf32>, vector<128x32xf32>, vector<8x128xf32> -> vector<8x128xf32>
    %7 = arith.addf %3, %6 : vector<8x128xf32>
    %c0_6 = arith.constant 0 : index
    %c0_7 = arith.constant 0 : index
    %8 = vector.load %arg7[%c0_6, %c0_7] : memref<8x128xf32, #tpu.memory_space<vmem>>, vector<8x128xf32>
    tpu.vector_store %arg7[%c0_6, %c0_7], %7 {strides = array<i32>} : memref<8x128xf32, #tpu.memory_space<vmem>>, vector<8x128xf32>,
    %c0_i32_8 = arith.constant 0 : i32
    %9 = arith.cmpi eq, %arg2, %c0_i32_8 : i32
    %10 = arith.extui %9 : i1 to i32
    %c0_i32_9 = arith.constant 0 : i32
    %11 = arith.cmpi ne, %10, %c0_i32_9 : i32
    scf.if %11 {
      %c0_10 = arith.constant 0 : index
      %c0_11 = arith.constant 0 : index
      %12 = vector.load %arg7[%c0_10, %c0_11] : memref<8x128xf32, #tpu.memory_space<vmem>>, vector<8x128xf32>
      %c0_12 = arith.constant 0 : index
      %c0_13 = arith.constant 0 : index
      %13 = vector.load %arg5[%c0_12, %c0_13] : memref<1x128xf32, #tpu.memory_space<vmem>>, vector<1x128xf32>
      %14 = vector.broadcast %13 : vector<1x128xf32> to vector<8x128xf32>
      %15 = arith.addf %12, %14 : vector<8x128xf32>
      %c0_14 = arith.constant 0 : index
      %c0_15 = arith.constant 0 : index
      %16 = vector.load %arg6[%c0_14, %c0_15] : memref<8x128xf32, #tpu.memory_space<vmem>>, vector<8x128xf32>
      tpu.vector_store %arg6[%c0_14, %c0_15], %15 {strides = array<i32>} : memref<8x128xf32, #tpu.memory_space<vmem>>, vector<8x128xf32>,
    } else {
    }
    return
  }
  func.func @transform_0(%arg0: i32, %arg1: i32, %arg2: i32) -> (i32, i32) {
    %c0_i32 = arith.constant 0 : i32
    return %arg0, %arg2 : i32, i32
  }
  func.func @transform_1(%arg0: i32, %arg1: i32, %arg2: i32) -> (i32, i32) {
    %c0_i32 = arith.constant 0 : i32
    return %arg1, %arg2 : i32, i32
  }
  func.func @transform_2(%arg0: i32, %arg1: i32, %arg2: i32) -> (i32, i32) {
    %c0_i32 = arith.constant 0 : i32
    %c0_i32_0 = arith.constant 0 : i32
    return %c0_i32, %arg1 : i32, i32
  }
  func.func @transform_3(%arg0: i32, %arg1: i32, %arg2: i32) -> (i32, i32) {
    %c0_i32 = arith.constant 0 : i32
    return %arg0, %arg1 : i32, i32
  }
}

</mosaic_0001>

<bundles_post_ra>
// kernel: tpu_custom_call.1
= control target key start
LH: loop header
LB: loop body
LE: loop exit
PB: predicated region body
PF: predicated region fallthrough
CT: control target
= control target key end

     0   :  { %vm38_vm0 = vcmask 261120   ;;  %v319_v2 = vmov 0.0|0.0   ;;  %vm320_vm2 = vmmov 0   ;;  %v321_v5 = vmov 0.0   ;;  %s432_s0 = inlined_call_operand.vmem [shape: f32[8,32], index: 0, kind: input, shape index: {}]   ;;  %s433_s1 = inlined_call_operand.vmem [shape: f32[128,32], index: 1, kind: input, shape index: {}]   ;;  %s434_s2 = inlined_call_operand.vmem [shape: f32[1,128], index: 2, kind: input, shape index: {}]   ;;  %s435_s3 = inlined_call_operand.hbm [shape: f32[8,128], index: 3, kind: output, shape index: {}]  }
   0x1   :  { %v22_v0 = vld [vmem:[%s433_s1] sm:$0xff]  ;;  %v23_v1 = vld [vmem:[%s433_s1 + $0x8] sm:$0xff]  ;;  %259 = vmatprep.subr.bf16.mxu0 %v319_v2  ;;  %vm351_vm1 = vmpackc.low %vm38_vm0, %vm38_vm0  ;;  %256 = vmatprep.mubr.msk.f32.mxu0 %vm320_vm2, %v321_v5 }
   0x2   :  { %v260_v3 = vpack.c.bf16 %v23_v1, %v22_v0  ;;  %v24_v6 = vld [vmem:[%s433_s1 + $0x10] sm:$0xff]  ;;  %v25_v7 = vld [vmem:[%s433_s1 + $0x18] sm:$0xff] }
   0x4   :  { %262 = vmatpush3.bf16.xpose.msk.msra.mxu0 %vm351_vm1, %v260_v3 }
   0x5   :  { %263 = vmatprep.subr.bf16.mxu0 %v319_v2 }
   0x6   :  { %8 = vsyncpa [#allocation4], 0  ;;  %v264_v8 = vpack.c.bf16 %v25_v7, %v24_v6  ;;  %v26_v9 = vld [vmem:[%s433_s1 + $0x20] sm:$0xff]  ;;  %v27_v10 = vld [vmem:[%s433_s1 + $0x28] sm:$0xff]  ;;  %s322_s21 = smov [#allocation3]  }
   0x7   :  { %v268_v11 = vpack.c.bf16 %v27_v10, %v26_v9  ;;  %v28_v12 = vld [vmem:[%s433_s1 + $0x30] sm:$0xff]  ;;  %v29_v13 = vld [vmem:[%s433_s1 + $0x38] sm:$0xff]  ;;  %v30_v15 = vld [vmem:[%s433_s1 + $0x40] sm:$0xff]  ;;  %s181_s22 = sshll.u32 %s322_s21, 4  ;;  %s182_s22 = int_to_ptr.vmem [resolvable:$true] %s181_s22 }
   0x8   :  { %v272_v14 = vpack.c.bf16 %v29_v13, %v28_v12  ;;  %v31_v16 = vld [vmem:[%s433_s1 + $0x48] sm:$0xff]  ;;  %v32_v18 = vld [vmem:[%s433_s1 + $0x50] sm:$0xff]  ;;  %v33_v19 = vld [vmem:[%s433_s1 + $0x58] sm:$0xff]  ;;  %p300_p1 = scmp.lt.s32.totalorder %s182_s22, %s182_s22 }
   0x9   :  { %v276_v17 = vpack.c.bf16 %v31_v16, %v30_v15  ;;  %v280_v20 = vpack.c.bf16 %v33_v19, %v32_v18  ;;  %v34_v21 = vld [vmem:[%s433_s1 + $0x60] sm:$0xff]  ;;  %v35_v22 = vld [vmem:[%s433_s1 + $0x68] sm:$0xff]  ;;  %v36_v24 = vld [vmem:[%s433_s1 + $0x70] sm:$0xff] }
   0xa   :  { %v284_v23 = vpack.c.bf16 %v35_v22, %v34_v21  ;;  %v37_v25 = vld [vmem:[%s433_s1 + $0x78] sm:$0xff]  ;;  %v21_v27 = vld [vmem:[%s432_s0] sm:$0xff]  ;;  %s295_s1 = scalar_lea.vmem %s182_s22, 128 }
   0xb   :  { %v288_v26 = vpack.c.bf16 %v37_v25, %v36_v24  ;;  %v206_v28 = vld [vmem:[%s434_s2] ss:$0 sm:$0xff]  ;;  %p296_p0 = scmp.ne.s32.totalorder %s182_s22, %s295_s1  ;;  %p301_p2 = scmp.lt.s32.totalorder %s295_s1, %s295_s1 }
   0xc   :  { %266 = vmatpush3.bf16.xpose.msk.msra.mxu0 %vm351_vm1, %v264_v8 }
   0xd   :  { %267 = vmatprep.subr.bf16.mxu0 %v319_v2  ;;  %p302_p3 = por %p301_p2, %p300_p1 }
   0xf   :  { %p303_p4 = pnand %p302_p3, %p296_p0 }
  0x14   :  { %270 = vmatpush3.bf16.xpose.msk.msra.mxu0 %vm351_vm1, %v268_v11 }
  0x15   :  { %271 = vmatprep.subr.bf16.mxu0 %v319_v2 }
  0x1c   :  { %274 = vmatpush3.bf16.xpose.msk.msra.mxu0 %vm351_vm1, %v272_v14 }
  0x1d   :  { %275 = vmatprep.subr.bf16.mxu0 %v319_v2 }
  0x24   :  { %278 = vmatpush3.bf16.xpose.msk.msra.mxu0 %vm351_vm1, %v276_v17 }
  0x25   :  { %279 = vmatprep.subr.bf16.mxu0 %v319_v2 }
  0x2c   :  { %282 = vmatpush3.bf16.xpose.msk.msra.mxu0 %vm351_vm1, %v280_v20 }
  0x2d   :  { %283 = vmatprep.subr.bf16.mxu0 %v319_v2 }
  0x34   :  { %286 = vmatpush3.bf16.xpose.msk.msra.mxu0 %vm351_vm1, %v284_v23 }
  0x35   :  { %287 = vmatprep.subr.bf16.mxu0 %v319_v2 }
  0x3c   :  { %290 = vmatpush3.bf16.xpose.msk.msra.mxu0 %vm351_vm1, %v288_v26 }
  0x43   :  { %257 = vmatmul.mubr.msk.f32.vlgmr.msra.gmra.mrb[0].mxu0 %vm38_vm0, %v21_v27 }
 0x116   :  { %v156_v29 = vpop.f32.mrb[0].mxu0 }
 0x117   :  { %v173_v30 = vadd.f32 %v206_v28, %v156_v29  ;;  %v258_v31 = vpop.f32.mrb[1].mxu0 }
 0x119   :  { %174 = vst [vmem:[#allocation3] sm:$0xff] %v173_v30 }
 0x11a   :  { %306 = shalt.err (!%p303_p4)
}
 0x11b   :  { %s307_s24 = scalar_lea.hbm %s435_s3, 128 }
 0x11c   :  { %p308_p5 = scmp.ne.s32.totalorder %s435_s3, %s307_s24  ;;  %p311_p6 = scmp.lt.u32.totalorder %s307_s24, %s435_s3 }
 0x11e   :  { %p313_p7 = pnand %p311_p6, %p308_p5 }
 0x120   :  { %316 = shalt.err (!%p313_p7)
}
 0x121   :  { %184 = dma.vmem_to_hbm [thread:$0]  %s182_s22, 128, %s435_s3, [#allocation4]  }
 0x122   :  { %317 = dma.done.wait [#allocation4], 128  }
 0x123   :  { %318 = vsyncadd [#allocation4], 4294967168 }
 0x124   :  { %188 = vsyncpa [#allocation4], 1 }

// kernel: tpu_custom_call.1
= control target key start
LH: loop header
LB: loop body
LE: loop exit
PB: predicated region body
PF: predicated region fallthrough
CT: control target
= control target key end

     0   :  { %vm38_vm0 = vcmask 261120   ;;  %v319_v2 = vmov 0.0|0.0   ;;  %vm320_vm2 = vmmov 0   ;;  %v321_v5 = vmov 0.0   ;;  %s432_s0 = inlined_call_operand.vmem [shape: f32[8,32], index: 0, kind: input, shape index: {}]   ;;  %s433_s1 = inlined_call_operand.vmem [shape: f32[128,32], index: 1, kind: input, shape index: {}]   ;;  %s434_s2 = inlined_call_operand.vmem [shape: f32[1,128], index: 2, kind: input, shape index: {}]   ;;  %s435_s3 = inlined_call_operand.hbm [shape: f32[8,128], index: 3, kind: output, shape index: {}]  }
   0x1   :  { %v22_v0 = vld [vmem:[%s433_s1] sm:$0xff]  ;;  %v23_v1 = vld [vmem:[%s433_s1 + $0x8] sm:$0xff]  ;;  %259 = vmatprep.subr.bf16.mxu0 %v319_v2  ;;  %vm351_vm1 = vmpackc.low %vm38_vm0, %vm38_vm0  ;;  %256 = vmatprep.mubr.msk.f32.mxu0 %vm320_vm2, %v321_v5 }
   0x2   :  { %v260_v3 = vpack.c.bf16 %v23_v1, %v22_v0  ;;  %v24_v6 = vld [vmem:[%s433_s1 + $0x10] sm:$0xff]  ;;  %v25_v7 = vld [vmem:[%s433_s1 + $0x18] sm:$0xff] }
   0x4   :  { %262 = vmatpush3.bf16.xpose.msk.msra.mxu0 %vm351_vm1, %v260_v3 }
   0x5   :  { %263 = vmatprep.subr.bf16.mxu0 %v319_v2 }
   0x6   :  { %8 = vsyncpa [#allocation4], 0  ;;  %v264_v8 = vpack.c.bf16 %v25_v7, %v24_v6  ;;  %v26_v9 = vld [vmem:[%s433_s1 + $0x20] sm:$0xff]  ;;  %v27_v10 = vld [vmem:[%s433_s1 + $0x28] sm:$0xff]  ;;  %s322_s21 = smov [#allocation3]  }
   0x7   :  { %v268_v11 = vpack.c.bf16 %v27_v10, %v26_v9  ;;  %v28_v12 = vld [vmem:[%s433_s1 + $0x30] sm:$0xff]  ;;  %v29_v13 = vld [vmem:[%s433_s1 + $0x38] sm:$0xff]  ;;  %v30_v15 = vld [vmem:[%s433_s1 + $0x40] sm:$0xff]  ;;  %s181_s22 = sshll.u32 %s322_s21, 4  ;;  %s182_s22 = int_to_ptr.vmem [resolvable:$true] %s181_s22 }
   0x8   :  { %v272_v14 = vpack.c.bf16 %v29_v13, %v28_v12  ;;  %v31_v16 = vld [vmem:[%s433_s1 + $0x48] sm:$0xff]  ;;  %v32_v18 = vld [vmem:[%s433_s1 + $0x50] sm:$0xff]  ;;  %v33_v19 = vld [vmem:[%s433_s1 + $0x58] sm:$0xff]  ;;  %p300_p1 = scmp.lt.s32.totalorder %s182_s22, %s182_s22 }
   0x9   :  { %v276_v17 = vpack.c.bf16 %v31_v16, %v30_v15  ;;  %v280_v20 = vpack.c.bf16 %v33_v19, %v32_v18  ;;  %v34_v21 = vld [vmem:[%s433_s1 + $0x60] sm:$0xff]  ;;  %v35_v22 = vld [vmem:[%s433_s1 + $0x68] sm:$0xff]  ;;  %v36_v24 = vld [vmem:[%s433_s1 + $0x70] sm:$0xff] }
   0xa   :  { %v284_v23 = vpack.c.bf16 %v35_v22, %v34_v21  ;;  %v37_v25 = vld [vmem:[%s433_s1 + $0x78] sm:$0xff]  ;;  %v21_v27 = vld [vmem:[%s432_s0] sm:$0xff]  ;;  %s295_s1 = scalar_lea.vmem %s182_s22, 128 }
   0xb   :  { %v288_v26 = vpack.c.bf16 %v37_v25, %v36_v24  ;;  %v206_v28 = vld [vmem:[%s434_s2] ss:$0 sm:$0xff]  ;;  %p296_p0 = scmp.ne.s32.totalorder %s182_s22, %s295_s1  ;;  %p301_p2 = scmp.lt.s32.totalorder %s295_s1, %s295_s1 }
   0xc   :  { %266 = vmatpush3.bf16.xpose.msk.msra.mxu0 %vm351_vm1, %v264_v8 }
   0xd   :  { %267 = vmatprep.subr.bf16.mxu0 %v319_v2  ;;  %p302_p3 = por %p301_p2, %p300_p1 }
   0xf   :  { %p303_p4 = pnand %p302_p3, %p296_p0 }
  0x14   :  { %270 = vmatpush3.bf16.xpose.msk.msra.mxu0 %vm351_vm1, %v268_v11 }
  0x15   :  { %271 = vmatprep.subr.bf16.mxu0 %v319_v2 }
  0x1c   :  { %274 = vmatpush3.bf16.xpose.msk.msra.mxu0 %vm351_vm1, %v272_v14 }
  0x1d   :  { %275 = vmatprep.subr.bf16.mxu0 %v319_v2 }
  0x24   :  { %278 = vmatpush3.bf16.xpose.msk.msra.mxu0 %vm351_vm1, %v276_v17 }
  0x25   :  { %279 = vmatprep.subr.bf16.mxu0 %v319_v2 }
  0x2c   :  { %282 = vmatpush3.bf16.xpose.msk.msra.mxu0 %vm351_vm1, %v280_v20 }
  0x2d   :  { %283 = vmatprep.subr.bf16.mxu0 %v319_v2 }
  0x34   :  { %286 = vmatpush3.bf16.xpose.msk.msra.mxu0 %vm351_vm1, %v284_v23 }
  0x35   :  { %287 = vmatprep.subr.bf16.mxu0 %v319_v2 }
  0x3c   :  { %290 = vmatpush3.bf16.xpose.msk.msra.mxu0 %vm351_vm1, %v288_v26 }
  0x43   :  { %257 = vmatmul.mubr.msk.f32.vlgmr.msra.gmra.mrb[0].mxu0 %vm38_vm0, %v21_v27 }
 0x116   :  { %v156_v29 = vpop.f32.mrb[0].mxu0 }
 0x117   :  { %v173_v30 = vadd.f32 %v206_v28, %v156_v29  ;;  %v258_v31 = vpop.f32.mrb[1].mxu0 }
 0x119   :  { %174 = vst [vmem:[#allocation3] sm:$0xff] %v173_v30 }
 0x11a   :  { %306 = shalt.err (!%p303_p4)
}
 0x11b   :  { %s307_s24 = scalar_lea.hbm %s435_s3, 128 }
 0x11c   :  { %p308_p5 = scmp.ne.s32.totalorder %s435_s3, %s307_s24  ;;  %p311_p6 = scmp.lt.u32.totalorder %s307_s24, %s435_s3 }
 0x11e   :  { %p313_p7 = pnand %p311_p6, %p308_p5 }
 0x120   :  { %316 = shalt.err (!%p313_p7)
}
 0x121   :  { %184 = dma.vmem_to_hbm [thread:$0]  %s182_s22, 128, %s435_s3, [#allocation4]  }
 0x122   :  { %317 = dma.done.wait [#allocation4], 128  }
 0x123   :  { %318 = vsyncadd [#allocation4], 4294967168 }
 0x124   :  { %188 = vsyncpa [#allocation4], 1 }

</bundles_post_ra>
